<compile_context>
chip_gen: v5e
topology: v5e:2x2
jax: 0.10.0
libtpu: 0.0.40
codegen_flags: <defaults>
</compile_context>

<pallas_src>
import functools

import jax
import jax.numpy as jnp
from jax.experimental import pallas as pl
from jax.experimental.pallas import tpu as pltpu


def _vq_kernel(z_ref, emb_ref, esq_ref, zq_ref, idx_ref, sse_ref, *,
               use_bf16_cross):
    """One (batch, m-chunk) tile, channel-major.

    z_ref   : (1, C, TM) f32   encoder outputs for this tile (NCHW slab)
    emb_ref : (K, C)     f32   full codebook
    esq_ref : (K, 1)     f32   precomputed ||e_k||^2 column
    zq_ref  : (1, C, TM) f32   quantized outputs (same layout as input)
    idx_ref : (1, 1, 1, TM) i32  argmin codebook indices (lane-dense)
    sse_ref : (1, 1, 1, 1)  f32  per-tile sum((z_q - z_e)^2)
    """
    z_cm = z_ref[0]                       # (C, TM)
    e = emb_ref[...]                      # (K, C)
    esq = esq_ref[...]                    # (K, 1)
    k = e.shape[0]

    # Cross term on the MXU: (K, C) @ (C, TM) -> (K, TM).
    if use_bf16_cross:
        lhs, rhs = e.astype(jnp.bfloat16), z_cm.astype(jnp.bfloat16)
    else:
        lhs, rhs = e, z_cm
    cross = jax.lax.dot_general(
        lhs, rhs, (((1,), (0,)), ((), ())),
        preferred_element_type=jnp.float32)                    # (K, TM)

    # Distance for argmin: ||e_k||^2 - 2 z.e_k  (||z||^2 is constant per column
    # and cannot change the argmin, so it is omitted).
    d = esq - 2.0 * cross                                      # (K, TM)

    # First-minimal-index argmin over K (axis 0), TPU-friendly 2-D iota.
    dmin = jnp.min(d, axis=0, keepdims=True)                   # (1, TM)
    row = jax.lax.broadcasted_iota(jnp.int32, d.shape, 0)      # (K, TM)
    idx = jnp.min(jnp.where(d <= dmin, row, k), axis=0, keepdims=True)  # (1, TM)
    idx_ref[...] = idx[None, None]                             # (1,1,1,TM), lane-dense

    # Codebook lookup via one-hot matmul on the MXU (f32, exact): e^T @ onehot.
    one_hot = (row == idx).astype(jnp.float32)                 # (K, TM)
    zq_cm = jax.lax.dot_general(
        e, one_hot, (((0,), (0,)), ((), ())),
        preferred_element_type=jnp.float32)                    # (C, TM)
    zq_ref[0] = zq_cm.astype(zq_ref.dtype)

    # Per-tile partial SSE for the commitment/codebook loss (summed in wrapper).
    diff = zq_cm - z_cm
    sse_ref[...] = jnp.sum(diff * diff).reshape(1, 1, 1, 1)


@functools.partial(jax.jit,
                   static_argnames=("beta", "tile_m", "use_bf16_cross"))
def codebook_forward(z_e, embedding, *, beta=0.25, tile_m=512,
                     use_bf16_cross=False):
    """Pallas implementation of Codebook.forward.

    z_e       : (B, C, H, W) float32 (NCHW, matching the PyTorch module)
    embedding : (K, D) float32, D == C
    Returns (z_q [NCHW], min_encoding_indices [B*H*W] int32, loss scalar).
    """
    b, c, h, w = z_e.shape
    k, d_dim = embedding.shape
    assert d_dim == c

    m = h * w
    # Pick a lane-dense, dividing spatial tile (sweep 256-1024 for big inputs).
    tile_m = min(tile_m, m)
    if (m % tile_m != 0) or (tile_m % 128 != 0 and tile_m != m):
        tile_m = m
    n_mt = m // tile_m

    # Free, contiguous reshapes -- no NCHW<->NHWC HBM round trips.
    z3 = z_e.reshape(b, c, m).astype(jnp.float32)              # (B, C, M)
    emb_f32 = embedding.astype(jnp.float32)                    # (K, C)
    esq = jnp.sum(emb_f32 * emb_f32, axis=1, keepdims=True)    # (K, 1)

    kernel = functools.partial(_vq_kernel, use_bf16_cross=use_bf16_cross)

    zq3, idx, sse = pl.pallas_call(
        kernel,
        out_shape=(
            jax.ShapeDtypeStruct((b, c, m), jnp.float32),           # z_q
            jax.ShapeDtypeStruct((b, n_mt, 1, tile_m), jnp.int32),  # indices
            jax.ShapeDtypeStruct((b, n_mt, 1, 1), jnp.float32),     # partial SSE
        ),
        grid_spec=pltpu.PrefetchScalarGridSpec(
            num_scalar_prefetch=0,
            grid=(b, n_mt),
            in_specs=[
                pl.BlockSpec((1, c, tile_m), lambda i, j: (i, 0, j)),  # z tile
                pl.BlockSpec((k, c), lambda i, j: (0, 0)),             # codebook
                pl.BlockSpec((k, 1), lambda i, j: (0, 0)),             # ||e||^2
            ],
            out_specs=[
                pl.BlockSpec((1, c, tile_m), lambda i, j: (i, 0, j)),     # z_q
                pl.BlockSpec((1, 1, 1, tile_m), lambda i, j: (i, j, 0, 0)),  # idx
                pl.BlockSpec((1, 1, 1, 1), lambda i, j: (i, j, 0, 0)),       # sse
            ],
        ),
        compiler_params=pltpu.CompilerParams(
            dimension_semantics=("parallel", "parallel")),  # no cross-step state
    )(z3, emb_f32, esq)

    # (B, n_mt, 1, tile_m) flattens exactly to NHWC row order: b*H*W + h*W + w.
    min_encoding_indices = idx.reshape(-1)

    # loss = mean((sg[z_q]-z_e)^2) + beta*mean((z_q-sg[z_e])^2); value-wise both
    # terms equal mean((z_q - z_e)^2).
    loss = (1.0 + beta) * jnp.sum(sse) / jnp.float32(b * m * c)

    # Straight-through: z_q = z_e + sg(z_q - z_e) == z_q value-wise.
    z_q = zq3.reshape(b, c, h, w)                              # free reshape
    return z_q, min_encoding_indices, loss


def _reference(z_e, embedding, beta):
    """Pure-JAX reference matching the PyTorch module semantics."""
    b, c, h, w = z_e.shape
    zf = jnp.transpose(z_e, (0, 2, 3, 1)).reshape(-1, c)
    d = (jnp.sum(zf ** 2, axis=1, keepdims=True)
         + jnp.sum(embedding ** 2, axis=1)
         - 2.0 * zf @ embedding.T)
    idx = jnp.argmin(d, axis=1)
    zq = embedding[idx]
    loss = (1.0 + beta) * jnp.mean((zq - zf) ** 2)
    zq_out = jnp.transpose(zq.reshape(b, h, w, c), (0, 3, 1, 2))
    return zq_out, idx.astype(jnp.int32), loss


if __name__ == "__main__":
    # Module hyperparameters (args): num_codebook_vectors, latent_dim, beta.
    NUM_CODEBOOK_VECTORS = 128
    LATENT_DIM = 32
    BETA = 0.25

    key = jax.random.PRNGKey(0)
    k_emb, k_x = jax.random.split(key)

    # nn.Embedding weight initialized uniform(-1/K, 1/K), shape (K, D).
    embedding = jax.random.uniform(
        k_emb, (NUM_CODEBOOK_VECTORS, LATENT_DIM), dtype=jnp.float32,
        minval=-1.0 / NUM_CODEBOOK_VECTORS, maxval=1.0 / NUM_CODEBOOK_VECTORS)

    # Encoder output z_e in NCHW: (B=2, C=latent_dim, H=16, W=16) -> 512 rows.
    z_e = jax.random.normal(k_x, (2, LATENT_DIM, 16, 16), dtype=jnp.float32) * 0.01

    z_q, indices, loss = codebook_forward(z_e, embedding, beta=BETA)
    jax.block_until_ready((z_q, indices, loss))

    # Correctness check against pure-JAX reference.
    z_q_ref, idx_ref, loss_ref = _reference(z_e, embedding, BETA)
    assert z_q.shape == z_e.shape
    assert indices.shape == (z_e.shape[0] * z_e.shape[2] * z_e.shape[3],)
    assert bool(jnp.all(indices == idx_ref))
    assert bool(jnp.allclose(z_q, z_q_ref, atol=1e-5, rtol=1e-5))
    assert bool(jnp.allclose(loss, loss_ref, atol=1e-6, rtol=1e-5))

    print("KERNEL_OK")
</pallas_src>

<mosaic_0001>
module attributes {stable_mosaic.version = 11 : i64} {
  func.func @_vq_kernel(%arg0: i32, %arg1: i32, %arg2: memref<1x32x256xf32, #tpu.memory_space<vmem>>, %arg3: memref<128x32xf32, #tpu.memory_space<vmem>>, %arg4: memref<128x1xf32, #tpu.memory_space<vmem>>, %arg5: memref<1x32x256xf32, #tpu.memory_space<vmem>>, %arg6: memref<1x1x1x256xi32, #tpu.memory_space<vmem>>, %arg7: memref<1x1x1x1xf32, #tpu.memory_space<vmem>>) attributes {dimension_semantics = [#tpu.dimension_semantics<parallel>, #tpu.dimension_semantics<parallel>], iteration_bounds = array<i64: 2, 1>, scalar_prefetch = 0 : i64, scratch_operands = 0 : i64, tpu.core_type = #tpu.core_type<tc>, window_params = [{transform_indices = @transform_0, window_bounds = array<i64: 1, 32, 256>}, {pipeline_mode = #tpu.pipeline_mode<synchronous>, transform_indices = @transform_1, window_bounds = array<i64: 128, 32>}, {pipeline_mode = #tpu.pipeline_mode<synchronous>, transform_indices = @transform_2, window_bounds = array<i64: 128, 1>}, {transform_indices = @transform_3, window_bounds = array<i64: 1, 32, 256>}, {transform_indices = @transform_4, window_bounds = array<i64: 1, 1, 1, 256>}, {transform_indices = @transform_5, window_bounds = array<i64: 1, 1, 1, 1>}]} {
    %c0 = arith.constant 0 : index
    %c0_0 = arith.constant 0 : index
    %c0_1 = arith.constant 0 : index
    %0 = vector.load %arg2[%c0, %c0_0, %c0_1] : memref<1x32x256xf32, #tpu.memory_space<vmem>>, vector<1x32x256xf32>
    %1 = vector.shape_cast %0 : vector<1x32x256xf32> to vector<32x256xf32>
    %c0_2 = arith.constant 0 : index
    %c0_3 = arith.constant 0 : index
    %2 = vector.load %arg3[%c0_2, %c0_3] : memref<128x32xf32, #tpu.memory_space<vmem>>, vector<128x32xf32>
    %c0_4 = arith.constant 0 : index
    %c0_5 = arith.constant 0 : index
    %3 = vector.load %arg4[%c0_4, %c0_5] : memref<128x1xf32, #tpu.memory_space<vmem>>, vector<128x1xf32>
    %cst = arith.constant dense<0.000000e+00> : vector<128x256xf32>
    %4 = tpu.matmul %2, %1, %cst {dimension_numbers = #tpu.dot_dimension_numbers<[1], [0], [0], [1], [0, 0, 1, 1], [], []>} : vector<128x32xf32>, vector<32x256xf32>, vector<128x256xf32> -> vector<128x256xf32>
    %cst_6 = arith.constant 2.000000e+00 : f32
    %5 = vector.broadcast %cst_6 : f32 to vector<128x256xf32>
    %6 = arith.mulf %5, %4 : vector<128x256xf32>
    %7 = vector.broadcast %3 : vector<128x1xf32> to vector<128x256xf32>
    %8 = arith.subf %7, %6 : vector<128x256xf32>
    %cst_7 = arith.constant dense<0x7F800000> : vector<256xf32>
    %9 = vector.multi_reduction <minimumf>, %8, %cst_7 [0] : vector<128x256xf32> to vector<256xf32>
    %10 = vector.shape_cast %9 : vector<256xf32> to vector<1x256xf32>
    %11 = tpu.iota {dimensions = array<i32: 0>} : vector<128x256xi32>
    %12 = vector.broadcast %10 : vector<1x256xf32> to vector<128x256xf32>
    %13 = arith.cmpf ole, %8, %12 : vector<128x256xf32>
    %c128_i32 = arith.constant 128 : i32
    %14 = vector.broadcast %c128_i32 : i32 to vector<128x256xi32>
    %15 = arith.select %13, %11, %14 : vector<128x256xi1>, vector<128x256xi32>
    %cst_8 = arith.constant dense<2147483647> : vector<256xi32>
    %16 = vector.multi_reduction <minsi>, %15, %cst_8 [0] : vector<128x256xi32> to vector<256xi32>
    %17 = vector.shape_cast %16 : vector<256xi32> to vector<1x256xi32>
    %18 = vector.shape_cast %17 : vector<1x256xi32> to vector<1x1x1x256xi32>
    %c0_9 = arith.constant 0 : index
    %c0_10 = arith.constant 0 : index
    %c0_11 = arith.constant 0 : index
    %c0_12 = arith.constant 0 : index
    %19 = vector.load %arg6[%c0_9, %c0_10, %c0_11, %c0_12] : memref<1x1x1x256xi32, #tpu.memory_space<vmem>>, vector<1x1x1x256xi32>
    tpu.vector_store %arg6[%c0_9, %c0_10, %c0_11, %c0_12], %18 {strides = array<i32>} : memref<1x1x1x256xi32, #tpu.memory_space<vmem>>, vector<1x1x1x256xi32>,
    %20 = vector.broadcast %17 : vector<1x256xi32> to vector<128x256xi32>
    %21 = arith.cmpi eq, %11, %20 : vector<128x256xi32>
    %22 = arith.extui %21 : vector<128x256xi1> to vector<128x256xi32>
    %23 = arith.sitofp %22 : vector<128x256xi32> to vector<128x256xf32>
    %cst_13 = arith.constant dense<0.000000e+00> : vector<32x256xf32>
    %24 = tpu.matmul %2, %23, %cst_13 {dimension_numbers = #tpu.dot_dimension_numbers<[0], [0], [1], [1], [0, 1, 1, 1], [], []>} : vector<128x32xf32>, vector<128x256xf32>, vector<32x256xf32> -> vector<32x256xf32>
    %c0_14 = arith.constant 0 : index
    %c0_15 = arith.constant 0 : index
    %c0_16 = arith.constant 0 : index
    %25 = vector.load %arg5[%c0_14, %c0_15, %c0_16] : memref<1x32x256xf32, #tpu.memory_space<vmem>>, vector<1x32x256xf32>
    %26 = vector.shape_cast %25 : vector<1x32x256xf32> to vector<32x256xf32>
    %27 = vector.shape_cast %24 : vector<32x256xf32> to vector<1x32x256xf32>
    tpu.vector_store %arg5[%c0_14, %c0_15, %c0_16], %27 {strides = array<i32>} : memref<1x32x256xf32, #tpu.memory_space<vmem>>, vector<1x32x256xf32>,
    %28 = arith.subf %24, %1 : vector<32x256xf32>
    %29 = arith.mulf %28, %28 : vector<32x256xf32>
    %30 = vector.shape_cast %29 : vector<32x256xf32> to vector<1x32x256xf32>
    %cst_17 = arith.constant dense<0.000000e+00> : vector<1xf32>
    %31 = vector.multi_reduction <add>, %30, %cst_17 [1, 2] : vector<1x32x256xf32> to vector<1xf32>
    %32 = vector.shape_cast %31 : vector<1xf32> to vector<1x1x1xf32>
    %33 = vector.extract %32[0, 0, 0] : f32 from vector<1x1x1xf32>
    %34 = vector.broadcast %33 : f32 to vector<1x1x1x1xf32>
    %c0_18 = arith.constant 0 : index
    %c0_19 = arith.constant 0 : index
    %c0_20 = arith.constant 0 : index
    %c0_21 = arith.constant 0 : index
    %35 = vector.load %arg7[%c0_18, %c0_19, %c0_20, %c0_21] : memref<1x1x1x1xf32, #tpu.memory_space<vmem>>, vector<1x1x1x1xf32>
    tpu.vector_store %arg7[%c0_18, %c0_19, %c0_20, %c0_21], %34 {strides = array<i32>} : memref<1x1x1x1xf32, #tpu.memory_space<vmem>>, vector<1x1x1x1xf32>,
    return
  }
  func.func @transform_0(%arg0: i32, %arg1: i32) -> (i32, i32, i32) {
    %c0_i32 = arith.constant 0 : i32
    %c0_i32_0 = arith.constant 0 : i32
    return %arg0, %c0_i32, %arg1 : i32, i32, i32
  }
  func.func @transform_1(%arg0: i32, %arg1: i32) -> (i32, i32) {
    %c0_i32 = arith.constant 0 : i32
    %c0_i32_0 = arith.constant 0 : i32
    %c0_i32_1 = arith.constant 0 : i32
    return %c0_i32, %c0_i32_0 : i32, i32
  }
  func.func @transform_2(%arg0: i32, %arg1: i32) -> (i32, i32) {
    %c0_i32 = arith.constant 0 : i32
    %c0_i32_0 = arith.constant 0 : i32
    %c0_i32_1 = arith.constant 0 : i32
    return %c0_i32, %c0_i32_0 : i32, i32
  }
  func.func @transform_3(%arg0: i32, %arg1: i32) -> (i32, i32, i32) {
    %c0_i32 = arith.constant 0 : i32
    %c0_i32_0 = arith.constant 0 : i32
    return %arg0, %c0_i32, %arg1 : i32, i32, i32
  }
  func.func @transform_4(%arg0: i32, %arg1: i32) -> (i32, i32, i32, i32) {
    %c0_i32 = arith.constant 0 : i32
    %c0_i32_0 = arith.constant 0 : i32
    %c0_i32_1 = arith.constant 0 : i32
    return %arg0, %arg1, %c0_i32, %c0_i32_0 : i32, i32, i32, i32
  }
  func.func @transform_5(%arg0: i32, %arg1: i32) -> (i32, i32, i32, i32) {
    %c0_i32 = arith.constant 0 : i32
    %c0_i32_0 = arith.constant 0 : i32
    %c0_i32_1 = arith.constant 0 : i32
    return %arg0, %arg1, %c0_i32, %c0_i32_0 : i32, i32, i32, i32
  }
}

</mosaic_0001>

<bundles_post_ra>
// kernel: codebook_forward.1
= control target key start
LH: loop header
LB: loop body
LE: loop exit
PB: predicated region body
PF: predicated region fallthrough
CT: control target
= control target key end

     0   :  { %11 = vsyncpa [#allocation3], 0  ;;  %s2335_s0 = inlined_call_operand.vmem [shape: f32[2,32,256], index: 0, kind: input, shape index: {}]   ;;  %s2336_s1 = inlined_call_operand.vmem [shape: f32[128,32], index: 1, kind: input, shape index: {}]   ;;  %s2337_s2 = inlined_call_operand.vmem [shape: f32[128,1], index: 2, kind: input, shape index: {}]   ;;  %s2338_s3 = inlined_call_operand.vmem [shape: f32[2,32,256], index: 3, kind: output, shape index: {0}]   ;;  %s2339_s4 = inlined_call_operand.hbm [shape: s32[2,1,1,256], index: 4, kind: output, shape index: {1}]   ;;  %s2340_s5 = inlined_call_operand.vmem [shape: f32[2,1,1,1], index: 5, kind: output, shape index: {2}]  }
   0x1   :  { %13 = vsyncpa [#allocation3 + $0x1], 0  ;;  %s1575_s18 = smov 0   ;;  %s1577_s19 = smov 0  }
   0x2   :  { %s1579_s20 = smov 0   ;;  %s1581_s21 = smov 0  }
   0x3   :  { %s1583_s22 = smov 0   ;;  %s1585_s23 = smov 0  }
   0x4 LB: > { %s1272_s24 = sadd.s32 4294967295, %s1541_s23   ;;  %s1273_s25 = sadd.s32 4294967294, %s1541_s23   ;;  %s1541_s23 = sphi %s1585_s23, %s19_s23   ;;  %s1537_s22 = sphi %s1583_s22, %s2347_s22   ;;  %s1533_s21 = sphi %s1581_s21, %s2346_s21   ;;  %s1529_s20 = sphi %s1579_s20, %s2345_s20   ;;  %s1525_s19 = sphi %s1577_s19, %s2344_s19   ;;  %s1521_s18 = sphi %s1575_s18, %s2343_s18  }
   0x5   : > { %s31_s26 = sadd.s32 1, %s1537_s22  ;;  %s138_s27 = sadd.s32 1, %s1529_s20 }
   0x6   : > { %p33_p0 = scmp.ge.s32.totalorder %s31_s26, 2  ;;  %p148_p1 = scmp.ne.s32.totalorder %s1529_s20, %s1525_s19 }
   0x7   : > { %p149_p2 = scmp.eq.s32.totalorder %s1272_s24, 1  ;;  %p154_p3 = scmp.ne.s32.totalorder %s1525_s19, %s1521_s18 }
   0x8   : > { %s2349_s26 = smov (%p33_p0, %s31_s26), 0  ;;  %p155_p5 = scmp.eq.s32.totalorder %s1273_s25, 1 }
   0x9   : > { %p1615_p4 = por %p149_p2, %p148_p1  ;;  %s133_s29 = ssub.s32 %s1537_s22, %s2349_s26 }
   0xa   : > { %p1276_p6 = scmp.ge.s32.totalorder %s1541_s23, 1  ;;  %p136_p7 = scmp.eq.s32.totalorder %s133_s29, 0 }
   0xb   : > { %p1622_p8 = por %p155_p5, %p154_p3  ;;  %p220_p9 = scmp.lt.s32.totalorder %s1541_s23, 3 }
   0xc   : > { %s1628_s6 = scalar_select %p136_p7, %s1529_s20, %s138_s27  }
   0xd   : > { %p221_p10 = pnand %p1276_p6, %p220_p9 }
   0xe   : > { %p268_p11 = scmp.lt.s32.totalorder (!%p221_p10), %s1533_s21, 1  ;;  %s256_s16 = sand.u32 (!%p221_p10), 1, %s1525_s19  }
   0xf   : > { %224 = sbr.rel (%p221_p10) target bundleno = 685 (0x2ad), region = 32  ;;  %s2172_s17 = sshll.u32 (!%p221_p10), %s256_s16, 1 }
  0x10   : > { %s258_s24 = scalar_lea.vmem (!%p221_p10), [#allocation2], %s2172_s17 }
  0x11   : > { %s1128_s11 = sshll.u32 (!%p221_p10), %s258_s24, 4  ;;  %s1129_s11 = int_to_ptr.vmem [resolvable:$true] %s1128_s11 }
  0x14   : > { %v1543_v0 = vmov 0   ;;  %v317_v1 = vld [vmem:[%s2337_s2] sm:$0xff]  ;;  %s1635_s9 = scalar_select %p268_p11, %s1533_s21, 1  ;;  %v319_v2 = vld [vmem:[%s2337_s2 + $0x10] sm:$0xff]  ;;  %vm333_vm0 = vcmask 261120   ;;  %v1668_v12 = vld [vmem:[%s2336_s1 + $0x58] sm:$0xff] }
  0x15   : > { %1454 = vset.pattern.permute.xlu0 %v1543_v0  ;;  %1455 = vset.pattern.permute.xlu1 %v1543_v0  ;;  %v1663_v11 = vld [vmem:[%s2336_s1] sm:$0xff]  ;;  %v1675_v13 = vld [vmem:[%s2336_s1 + $0x50] sm:$0xff]  ;;  %v318_v14 = vld [vmem:[%s2337_s2 + $0x8] sm:$0xff] }
  0x16   : > { %546 = vperm.xlu0 %1454, %v317_v1   ;;  %1456 = vset.pattern.permute.xlu2 %v1543_v0  ;;  %s1382_s12 = sshll.u32 %s1635_s9, 6  ;;  %v320_v15 = vld [vmem:[%s2337_s2 + $0x18] sm:$0xff]  ;;  %v1696_v16 = vld [vmem:[%s2336_s1 + $0x8] sm:$0xff]  ;;  %v1701_v17 = vld [vmem:[%s2336_s1 + $0x60] sm:$0xff] }
  0x17   : > { %556 = vperm.xlu1 %1455, %v319_v2   ;;  %s1646_s15 = scalar_lea.vmem %s2335_s0, %s1382_s12  ;;  %v323_v18 = vld [vmem:[%s2337_s2 + $0x30] sm:$0xff]  ;;  %v324_v19 = vld [vmem:[%s2337_s2 + $0x38] sm:$0xff]  ;;  %v1723_v21 = vld [vmem:[%s2336_s1 + $0x68] sm:$0xff]  ;;  %s2273_s29 = scalar_lea.vmem %s2338_s3, %s1382_s12 }
  0x18   : > { %v299_v3 = vld [vmem:[%s1646_s15 + $0x30] sm:$0xff]  ;;  %v300_v4 = vld [vmem:[%s1646_s15 + $0x38] sm:$0xff]  ;;  %v297_v5 = vld [vmem:[%s1646_s15 + $0x20] sm:$0xff]  ;;  %s1379_s12 = sshll.u32 %s1533_s21, 1 }
  0x19   : > { %394 = vmatpush.msra.mxu0 %v299_v3  ;;  %1384 = vmatpush.msra.mxu2 %v299_v3  ;;  %v298_v6 = vld [vmem:[%s1646_s15 + $0x28] sm:$0xff]  ;;  %v295_v7 = vld [vmem:[%s1646_s15 + $0x10] sm:$0xff]  ;;  %v296_v8 = vld [vmem:[%s1646_s15 + $0x18] sm:$0xff]  ;;  %s1126_s10 = scalar_lea.hbm %s2339_s4, %s1379_s12 }
  0x1a   : > { %459 = vmatpush.msra.mxu1 %v300_v4  ;;  %1388 = vmatpush.msra.mxu3 %v300_v4  ;;  %v1655_v9 = vld [vmem:[%s1646_s15] sm:$0xff]  ;;  %v1658_v10 = vld [vmem:[%s1646_s15 + $0x8] sm:$0xff]  ;;  %v303_v20 = vld [vmem:[%s2336_s1 + $0x10] sm:$0xff]  ;;  %s1130_s13 = sshll.u32 %s1126_s10, 4  ;;  %s1131_s13 = int_to_ptr.hbm [resolvable:$true] %s1130_s13 }
  0x1b   : > { %395 = vmatpush.msra.mxu0 %v297_v5  ;;  %1385 = vmatpush.msra.mxu2 %v297_v5  ;;  %v326_v22 = vld [vmem:[%s2337_s2 + $0x48] sm:$0xff]  ;;  %v327_v23 = vld [vmem:[%s2337_s2 + $0x50] sm:$0xff]  ;;  %v321_v24 = vld [vmem:[%s2337_s2 + $0x20] sm:$0xff]  ;;  %s1477_s14 = sshra.s32 %s1131_s13, 4  ;;  %s1478_s14 = int_to_ptr.hbm [resolvable:$true] %s1477_s14 }
  0x1c   : > { %460 = vmatpush.msra.mxu1 %v298_v6  ;;  %1389 = vmatpush.msra.mxu3 %v298_v6  ;;  %v304_v25 = vld [vmem:[%s2336_s1 + $0x18] sm:$0xff]  ;;  %v1746_v26 = vld [vmem:[%s2336_s1 + $0x70] sm:$0xff]  ;;  %v329_v27 = vld [vmem:[%s2337_s2 + $0x60] sm:$0xff]  ;;  %s1479_s25 = scalar_lea.hbm %s1478_s14, 2  ;;  %p1484_p1 = scmp.lt.s32.totalorder %s1478_s14, %s2339_s4 }
  0x1d   : > { %396 = vmatpush.msra.mxu0 %v295_v7  ;;  %1386 = vmatpush.msra.mxu2 %v295_v7  ;;  %v330_v28 = vld [vmem:[%s2337_s2 + $0x68] sm:$0xff]  ;;  %v305_v30 = vld [vmem:[%s2336_s1 + $0x20] sm:$0xff]  ;;  %v1769_v31 = vld [vmem:[%s2336_s1 + $0x78] sm:$0xff]  ;;  %p1480_p12 = scmp.ne.s32.totalorder %s1478_s14, %s1479_s25 }
  0x1e   : > { %461 = vmatpush.msra.mxu1 %v296_v8  ;;  %1390 = vmatpush.msra.mxu3 %v296_v8  ;;  %v322_v29 = vld [vmem:[%s2337_s2 + $0x28] sm:$0xff]  ;;  %v332_v32 = vld [vmem:[%s2337_s2 + $0x78] sm:$0xff]  ;;  %v325_v33 = vld [vmem:[%s2337_s2 + $0x40] sm:$0xff] }
  0x1f   : > { %397 = vmatpush.msra.mxu0 %v1655_v9  ;;  %1387 = vmatpush.msra.mxu2 %v1655_v9  ;;  %v306_v34 = vld [vmem:[%s2336_s1 + $0x28] sm:$0xff]  ;;  %v328_v35 = vld [vmem:[%s2337_s2 + $0x58] sm:$0xff]  ;;  %v307_v36 = vld [vmem:[%s2336_s1 + $0x30] sm:$0xff]  ;;  %p1481_p13 = pnand %p1480_p12, %p1615_p4 }
  0x20   : > { %462 = vmatpush.msra.mxu1 %v1658_v10  ;;  %1391 = vmatpush.msra.mxu3 %v1658_v10  ;;  %v331_v37 = vld [vmem:[%s2337_s2 + $0x70] sm:$0xff]  ;;  %v308_v38 = vld [vmem:[%s2336_s1 + $0x38] sm:$0xff]  ;;  %v309_v39 = vld [vmem:[%s2336_s1 + $0x40] sm:$0xff] }
  0x21   : > { %1282 = vmatmul.msk.f32.vlgmr.msra.gmra.mxu0 %vm333_vm0, %v1663_v11  ;;  %1293 = vmatmul.msk.f32.vlgmr.msra.gmra.mxu2 %vm333_vm0, %v1668_v12  ;;  %v310_v40 = vld [vmem:[%s2336_s1 + $0x48] sm:$0xff]  ;;  %p1482_p0 = pneg %p1481_p13 }
  0x22   : > { %1298 = vmatmul.msk.f32.vlgmr.msra.gmra.mxu1 %vm333_vm0, %v1663_v11  ;;  %1308 = vmatmul.msk.f32.vlgmr.msra.gmra.mxu3 %vm333_vm0, %v1675_v13 }
  0x23   : > { %551 = vperm.xlu0 %1454, %v318_v14   ;;  %561 = vperm.xlu1 %1455, %v320_v15  }
  0x24   : > { %566 = vperm.xlu2 %1456, %v321_v24  }
  0x29   : > { %1283 = vmatmul.msk.f32.gmra.mxu0 %vm333_vm0, %v1696_v16  ;;  %1294 = vmatmul.msk.f32.gmra.mxu2 %vm333_vm0, %v1701_v17 }
  0x2a   : > { %1299 = vmatmul.msk.f32.gmra.mxu1 %vm333_vm0, %v1696_v16  ;;  %1309 = vmatmul.msk.f32.gmra.mxu3 %vm333_vm0, %v1668_v12 }
  0x2b   : > { %576 = vperm.xlu0 %1454, %v323_v18   ;;  %581 = vperm.xlu1 %1455, %v324_v19  }
  0x2c   : > { %571 = vperm.xlu2 %1456, %v322_v29  }
  0x31   : > { %1284 = vmatmul.msk.f32.gmra.mxu0 %vm333_vm0, %v303_v20  ;;  %1295 = vmatmul.msk.f32.gmra.mxu2 %vm333_vm0, %v1723_v21 }
  0x32   : > { %1300 = vmatmul.msk.f32.gmra.mxu1 %vm333_vm0, %v303_v20  ;;  %1310 = vmatmul.msk.f32.gmra.mxu3 %vm333_vm0, %v1701_v17 }
  0x33   : > { %591 = vperm.xlu0 %1454, %v326_v22   ;;  %596 = vperm.xlu1 %1455, %v327_v23  }
  0x34   : > { %586 = vperm.xlu2 %1456, %v325_v33  }
  0x39   : > { %1285 = vmatmul.msk.f32.gmra.mxu0 %vm333_vm0, %v304_v25  ;;  %1296 = vmatmul.msk.f32.gmra.mxu2 %vm333_vm0, %v1746_v26 }
  0x3a   : > { %1301 = vmatmul.msk.f32.gmra.mxu1 %vm333_vm0, %v304_v25  ;;  %1311 = vmatmul.msk.f32.gmra.mxu3 %vm333_vm0, %v1723_v21 }
  0x3b   : > { %606 = vperm.xlu0 %1454, %v329_v27   ;;  %611 = vperm.xlu1 %1455, %v330_v28  }
  0x3c   : > { %601 = vperm.xlu2 %1456, %v328_v35  }
  0x41   : > { %1286 = vmatmul.msk.f32.gmra.mxu0 %vm333_vm0, %v305_v30  ;;  %1297 = vmatmul.msk.f32.gmra.mxu2 %vm333_vm0, %v1769_v31 }
  0x42   : > { %1302 = vmatmul.msk.f32.gmra.mxu1 %vm333_vm0, %v305_v30  ;;  %1312 = vmatmul.msk.f32.gmra.mxu3 %vm333_vm0, %v1746_v26 }
  0x43   : > { %621 = vperm.xlu0 %1454, %v332_v32  }
  0x44   : > { %616 = vperm.xlu2 %1456, %v331_v37  }
  0x49   : > { %1287 = vmatmul.msk.f32.gmra.mxu0 %vm333_vm0, %v306_v34 }
  0x4a   : > { %1303 = vmatmul.msk.f32.gmra.mxu1 %vm333_vm0, %v306_v34  ;;  %1313 = vmatmul.msk.f32.gmra.mxu3 %vm333_vm0, %v1769_v31 }
  0x51   : > { %1288 = vmatmul.msk.f32.gmra.mxu0 %vm333_vm0, %v307_v36 }
  0x52   : > { %1304 = vmatmul.msk.f32.gmra.mxu1 %vm333_vm0, %v307_v36 }
  0x59   : > { %1289 = vmatmul.msk.f32.gmra.mxu0 %vm333_vm0, %v308_v38 }
  0x5a   : > { %1305 = vmatmul.msk.f32.gmra.mxu1 %vm333_vm0, %v308_v38 }
  0x61   : > { %1290 = vmatmul.msk.f32.gmra.mxu0 %vm333_vm0, %v309_v39 }
  0x62   : > { %1306 = vmatmul.msk.f32.gmra.mxu1 %vm333_vm0, %v309_v39 }
  0x69   : > { %1291 = vmatmul.msk.f32.gmra.mxu0 %vm333_vm0, %v310_v40 }
  0x6a   : > { %1307 = vmatmul.msk.f32.gmra.mxu1 %vm333_vm0, %v310_v40 }
  0x70   : > { %961 = vxpose.xlu1.b32.start [1/16] (narrow) %v1663_v11, 32 }
  0x71   : > { %1292 = vmatmul.msk.f32.gmra.mxu0 %vm333_vm0, %v1675_v13 }
  0x78   : > { %962 = vxpose.xlu1.b32.cont [2/16] (narrow) %v1696_v16, 32 }
  0x7e   : > { %v1827_v55 = vpop.permute.xlu2 %566 }
  0x80   : > { %963 = vxpose.xlu1.b32.cont [3/16] (narrow) %v303_v20, 32 }
  0x86   : > { %v572_v63 = vpop.permute.xlu2 %571 }
  0x88   : > { %964 = vxpose.xlu1.b32.cont [4/16] (narrow) %v304_v25, 32  ;;  %v547_v51 = vpop.permute.xlu0 %546 }
  0x89   : > { %v1825_v54 = vpop.permute.xlu1 %556 }
  0x8e   : > { %v1842_v8 = vpop.permute.xlu2 %586 }
  0x90   : > { %965 = vxpose.xlu1.b32.cont [5/16] (narrow) %v305_v30, 32 }
  0x95   : > { %v552_v59 = vpop.permute.xlu0 %551  ;;  %v562_v61 = vpop.permute.xlu1 %561 }
  0x98   : > { %966 = vxpose.xlu1.b32.cont [6/16] (narrow) %v306_v34, 32 }
  0x9d   : > { %v1837_v2 = vpop.permute.xlu0 %576  ;;  %v582_v5 = vpop.permute.xlu1 %581 }
  0x9e   : > { %v399_v41 = vpop.f32.mrf.mxu0 }
  0x9f   : > { %v464_v42 = vpop.f32.mrf.mxu1  ;;  %v512_v22 = vmul.f32 2.0, %v399_v41 }
  0xa0   : > { %967 = vxpose.xlu1.b32.cont [7/16] (narrow) %v307_v36, 32  ;;  %v513_v11 = vmul.f32 2.0, %v464_v42 }
  0xa1   : > { %v1872_v42 = vsub.f32 %v547_v51, %v512_v22 }
  0xa2   : > { %v1851_v18 = vsub.f32 %v547_v51, %v513_v11 }
  0xa4   : > { %v432_v56 = vpop.f32.mrf.mxu2 }
  0xa5   : > { %v494_v48 = vpop.f32.mrf.mxu3  ;;  %v1846_v14 = vpop.permute.xlu0 %591 }
  0xa6   : > { %v402_v43 = vpop.f32.mrf.mxu0  ;;  %v533_v34 = vmul.f32 2.0, %v494_v48  ;;  %v1864_v36 = vpop.permute.xlu1 %596 }
  0xa7   : > { %v467_v44 = vpop.f32.mrf.mxu1  ;;  %v514_v23 = vmul.f32 2.0, %v402_v43 }
  0xa8   : > { %968 = vxpose.xlu1.b32.cont [8/16] (narrow) %v308_v38, 32  ;;  %v515_v24 = vmul.f32 2.0, %v467_v44  ;;  %v602_v44 = vpop.permute.xlu2 %601 }
  0xa9   : > { %v1874_v43 = vsub.f32 %v552_v59, %v514_v23 }
  0xac   : > { %v1834_v1 = vpop.f32.mrf.mxu2 }
  0xad   : > { %v497_v53 = vpop.f32.mrf.mxu3 }
  0xae   : > { %v1820_v45 = vpop.f32.mrf.mxu0  ;;  %v535_v48 = vmul.f32 2.0, %v497_v53 }
  0xaf   : > { %v470_v46 = vpop.f32.mrf.mxu1 }
  0xb0   : > { %969 = vxpose.xlu1.b32.cont [9/16] (narrow) %v309_v39, 32  ;;  %v517_v7 = vmul.f32 2.0, %v470_v46 }
  0xb2   : > { %v1849_v15 = vsub.f32 %v1825_v54, %v517_v7 }
  0xb4   : > { %v677_v29 = vmin.f32 %v1851_v18, %v1849_v15 }
  0xb5   : > { %v1830_v60 = vpop.f32.mrf.mxu3 }
  0xb6   : > { %v408_v47 = vpop.f32.mrf.mxu0 }
  0xb7   : > { %v473_v49 = vpop.f32.mrf.mxu1 }
  0xb8   : > { %970 = vxpose.xlu1.b32.cont [10/16] (narrow) %v310_v40, 32  ;;  %v519_v19 = vmul.f32 2.0, %v473_v49 }
  0xba   : > { %v1866_v38 = vsub.f32 %v562_v61, %v519_v19 }
  0xbd   : > { %v1839_v3 = vpop.f32.mrf.mxu3 }
  0xbe   : > { %v1822_v50 = vpop.f32.mrf.mxu0 }
  0xbf   : > { %v476_v52 = vpop.f32.mrf.mxu1 }
  0xc0   : > { %971 = vxpose.xlu1.b32.cont [11/16] (narrow) %v1675_v13, 32  ;;  %v521_v13 = vmul.f32 2.0, %v476_v52 }
  0xc2   : > { %v1854_v20 = vsub.f32 %v1827_v55, %v521_v13 }
  0xc4   : > { %v679_v39 = vmin.f32 %v677_v29, %v1854_v20 }
  0xc5   : > { %v506_v25 = vpop.f32.mrf.mxu3 }
  0xc6   : > { %v414_v57 = vpop.f32.mrf.mxu0 }
  0xc7   : > { %v479_v58 = vpop.f32.mrf.mxu1  ;;  %v522_v27 = vmul.f32 2.0, %v414_v57 }
  0xc8   : > { %972 = vxpose.xlu1.b32.cont [12/16] (narrow) %v1668_v12, 32  ;;  %v1844_v12 = vpop.f32.mrf.mxu2  ;;  %v523_v30 = vmul.f32 2.0, %v479_v58  ;;  %v534_v58 = vmul.f32 2.0, %v432_v56 }
  0xc9   : > { %v1877_v46 = vsub.f32 %v572_v63, %v522_v27  ;;  %v539_v27 = vmul.f32 2.0, %v1839_v3  ;;  %v541_v3 = vmul.f32 2.0, %v506_v25  ;;  %v536_v25 = vmul.f32 2.0, %v1834_v1 }
  0xca   : > { %v1881_v52 = vsub.f32 %v572_v63, %v523_v30  ;;  %v612_v30 = vpop.permute.xlu1 %611 }
  0xce   : > { %v1832_v62 = vpop.f32.mrf.mxu0 }
  0xcf   : > { %v482_v0 = vpop.f32.mrf.mxu1 }
  0xd0   : > { %973 = vxpose.xlu1.b32.cont [13/16] (narrow) %v1701_v17, 32  ;;  %v525_v16 = vmul.f32 2.0, %v482_v0  ;;  %v518_v17 = vmul.f32 2.0, %v408_v47  ;;  %v1879_v47 = vsub.f32 %v552_v59, %v515_v24  ;;  %v441_v49 = vpop.f32.mrf.mxu2  ;;  %v520_v0 = vmul.f32 2.0, %v1822_v50 }
  0xd1   : > { %v1892_v59 = vsub.f32 %v1864_v36, %v533_v34  ;;  %v524_v50 = vmul.f32 2.0, %v1832_v62 }
  0xd2   : > { %v1859_v32 = vsub.f32 %v1837_v2, %v525_v16  ;;  %v1862_v35 = vsub.f32 %v562_v61, %v518_v17  ;;  %v607_v61 = vpop.permute.xlu0 %606  ;;  %v537_v16 = vmul.f32 2.0, %v1830_v60  ;;  %v1903_v17 = vsub.f32 %v602_v44, %v535_v48 }
  0xd3   : > { %v1908_v22 = vsub.f32 %v1827_v55, %v520_v0  ;;  %v538_v55 = vmul.f32 2.0, %v1844_v12 }
  0xd4   : > { %v681_v57 = vmin.f32 %v679_v39, %v1859_v32  ;;  %v657_v51 = vmin.f32 %v1874_v43, %v1862_v35  ;;  %v1927_v34 = vsub.f32 %v607_v61, %v537_v16 }
  0xd6   : > { %v420_v4 = vpop.f32.mrf.mxu0  ;;  %v659_v7 = vmin.f32 %v657_v51, %v1877_v46 }
  0xd7   : > { %v485_v6 = vpop.f32.mrf.mxu1  ;;  %v526_v37 = vmul.f32 2.0, %v420_v4 }
  0xd8   : > { %974 = vxpose.xlu1.b32.cont [14/16] (narrow) %v1723_v21, 32  ;;  %v527_v40 = vmul.f32 2.0, %v485_v6  ;;  %v444_v12 = vpop.f32.mrf.mxu2 }
  0xd9   : > { %v1887_v4 = vsub.f32 %v582_v5, %v526_v37 }
  0xda   : > { %v1894_v53 = vsub.f32 %v582_v5, %v527_v40  ;;  %v1931_v40 = vsub.f32 %v602_v44, %v534_v58 }
  0xdb   : > { %v661_v23 = vmin.f32 %v659_v7, %v1887_v4 }
  0xde   : > { %v423_v21 = vpop.f32.mrf.mxu0 }
  0xdf   : > { %v488_v28 = vpop.f32.mrf.mxu1  ;;  %v528_v24 = vmul.f32 2.0, %v423_v21  ;;  %v1924_v21 = vsub.f32 %v1837_v2, %v524_v50 }
  0xe0   : > { %v529_v33 = vmul.f32 2.0, %v488_v28  ;;  %975 = vxpose.xlu1.b32.cont [15/16] (narrow) %v1746_v26, 32  ;;  %v516_v26 = vmul.f32 2.0, %v1820_v45  ;;  %v678_v45 = vmin.f32 %v1879_v47, %v1866_v38 }
  0xe1   : > { %v1934_v48 = vsub.f32 %v1842_v8, %v528_v24 }
  0xe2   : > { %v1870_v41 = vsub.f32 %v1842_v8, %v529_v33  ;;  %v1898_v56 = vsub.f32 %v1825_v54, %v516_v26  ;;  %v680_v19 = vmin.f32 %v678_v45, %v1881_v52  ;;  %v509_v54 = vpop.f32.mrf.mxu3  ;;  %v617_v26 = vpop.permute.xlu2 %616 }
  0xe3   : > { %v543_v37 = vmul.f32 2.0, %v509_v54  ;;  %v622_v45 = vpop.permute.xlu0 %621  ;;  %v1947_v7 = vsub.f32 %v617_v26, %v541_v3  ;;  %v1956_v54 = vsub.f32 %v607_v61, %v536_v25 }
  0xe4   : > { %v683_v63 = vmin.f32 %v681_v57, %v1870_v41  ;;  %v682_v60 = vmin.f32 %v680_v19, %v1894_v53  ;;  %v1936_v57 = vsub.f32 %v612_v30, %v539_v27 }
  0xe5   : > { %v1945_v8 = vsub.f32 %v622_v45, %v543_v37 }
  0xe6   : > { %v426_v6 = vpop.f32.mrf.mxu0  ;;  %v685_v28 = vmin.f32 %v683_v63, %v1892_v59 }
  0xe7   : > { %v530_v11 = vmul.f32 2.0, %v426_v6  ;;  %v491_v13 = vpop.f32.mrf.mxu1  ;;  %v1943_v6 = vsub.f32 %v612_v30, %v538_v55  ;;  %v698_v55 = vlaneseq }
  0xe8   : > { %v531_v5 = vmul.f32 2.0, %v491_v13  ;;  %976 = vxpose.xlu1.b32.end [16/16] (narrow) %v1769_v31, 32  ;;  %v656_v31 = vmin.f32 %v1872_v42, %v1898_v56  ;;  %v687_v2 = vmin.f32 %v685_v28, %v1927_v34  ;;  %v542_v13 = vmul.f32 2.0, %v444_v12 }
  0xe9   : > { %v1912_v62 = vsub.f32 %v1846_v14, %v530_v11  ;;  %v540_v11 = vmul.f32 2.0, %v441_v49  ;;  %v1968_v37 = vshrl.u32 %v698_v55, 7 }
  0xea   : > { %v1918_v29 = vsub.f32 %v1846_v14, %v531_v5  ;;  %v658_v14 = vmin.f32 %v656_v31, %v1908_v22  ;;  %v689_v19 = vmin.f32 %v687_v2, %v1947_v7 }
  0xeb   : > { %v663_v33 = vmin.f32 %v661_v23, %v1912_v62  ;;  %v1962_v49 = vsub.f32 %v617_v26, %v540_v11  ;;  %v1971_v26 = vadd.s32 8, %v1968_v37  ;;  %v1976_v25 = vadd.s32 24, %v1968_v37 }
  0xec   : > { %v684_v39 = vmin.f32 %v682_v60, %v1918_v29  ;;  %v660_v63 = vmin.f32 %v658_v14, %v1924_v21  ;;  %v1960_v60 = vsub.f32 %v622_v45, %v542_v13  ;;  %v1979_v45 = vadd.s32 40, %v1968_v37 }
  0xed   : > { %v665_v44 = vmin.f32 %v663_v33, %v1931_v40  ;;  %v1991_v11 = vadd.s32 104, %v1968_v37  ;;  %v1998_v13 = vadd.s32 16, %v1968_v37 }
  0xee   : > { %v686_v51 = vmin.f32 %v684_v39, %v1903_v17  ;;  %v429_v0 = vpop.f32.mrf.mxu0  ;;  %v662_v16 = vmin.f32 %v660_v63, %v1934_v48  ;;  %v1982_v63 = vadd.s32 56, %v1968_v37 }
  0xef   : > { %v532_v58 = vmul.f32 2.0, %v429_v0  ;;  %v667_v23 = vmin.f32 %v665_v44, %v1943_v6  ;;  %v1985_v44 = vadd.s32 72, %v1968_v37 }
  0xf0   : > { %v688_v50 = vmin.f32 %v686_v51, %v1936_v57 }
  0xf1   : > { %v1952_v1 = vsub.f32 %v1864_v36, %v532_v58  ;;  %v669_v36 = vmin.f32 %v667_v23, %v1960_v60  ;;  %v1988_v58 = vadd.s32 88, %v1968_v37  ;;  %v2016_v23 = vadd.s32 80, %v1968_v37 }
  0xf2   : > { %v690_v5 = vmin.f32 %v688_v50, %v1945_v8 }
  0xf3   : > { %v664_v24 = vmin.f32 %v662_v16, %v1952_v1 }
  0xf4   : > { %v691_v27 = vmin.f32 %v689_v19, %v690_v5  ;;  %v2004_v19 = vadd.s32 32, %v1968_v37  ;;  %v2007_v5 = vadd.s32 48, %v1968_v37 }
  0xf5   : > { %v666_v28 = vmin.f32 %v664_v24, %v1956_v54 }
  0xf6   : > { %v692_v31 = vrot.slane %v691_v27, 4 }
  0xf7   : > { %v668_v30 = vmin.f32 %v666_v28, %v1962_v49  ;;  %v2026_v28 = vadd.s32 96, %v1968_v37 }
  0xf8   : > { %v693_v33 = vmin.f32 %v691_v27, %v692_v31 }
  0xf9   : > { %v670_v61 = vmin.f32 %v668_v30, %v669_v36  ;;  %v2031_v36 = vadd.s32 112, %v1968_v37 }
  0xfa   : > { %v694_v3 = vrot.slane %v693_v33, 2 }
  0xfb   : > { %v671_v39 = vrot.slane %v670_v61, 4 }
  0xfc   : > { %v695_v14 = vmin.f32 %v693_v33, %v694_v3 }
  0xfd   : > { %v672_v12 = vmin.f32 %v670_v61, %v671_v39 }
  0xfe   : > { %v696_v2 = vrot.slane %v695_v14, 1 }
  0xff   : > { %v673_v51 = vrot.slane %v672_v12, 2 }
 0x100   : > { %v1973_v0 = vmin.f32 %v695_v14, %v696_v2 }
 0x101   : > { %v674_v50 = vmin.f32 %v672_v12, %v673_v51 }
 0x102   : > { %vm718_vm1 = vcmp.le.f32.partialorder %v1879_v47, %v1973_v0  ;;  %vm722_vm2 = vcmp.le.f32.partialorder %v1866_v38, %v1973_v0  ;;  %vm726_vm3 = vcmp.le.f32.partialorder %v1881_v52, %v1973_v0  ;;  %vm730_vm4 = vcmp.le.f32.partialorder %v1894_v53, %v1973_v0 }
 0x103   : > { %v750_v16 = vsel %vm718_vm1, %v1971_v26, 128  ;;  %v754_v47 = vsel %vm722_vm2, %v1976_v25, 128  ;;  %v2013_v38 = vadd.s32 64, %v1968_v37  ;;  %vm734_vm5 = vcmp.le.f32.partialorder %v1918_v29, %v1973_v0 }
 0x104   : > { %vm738_vm6 = vcmp.le.f32.partialorder %v1903_v17, %v1973_v0  ;;  %vm820_vm7 = vcmp.lt.s32.totalorder %v750_v16, %v754_v47  ;;  %v675_v52 = vrot.slane %v674_v50, 1  ;;  %vm742_vm8 = vcmp.le.f32.partialorder %v1936_v57, %v1973_v0 }
 0x105   : > { %v758_v24 = vsel %vm726_vm3, %v1979_v45, 128  ;;  %v821_v27 = vsel %vm820_vm7, %v750_v16, %v754_v47  ;;  %v2034_v29 = vadd.s32 120, %v1968_v37  ;;  %v762_v17 = vsel %vm730_vm4, %v1982_v63, 128 }
 0x106   : > { %vm824_vm9 = vcmp.lt.s32.totalorder %v821_v27, %v758_v24  ;;  %v2028_v31 = vmin.f32 %v674_v50, %v675_v52  ;;  %v766_v57 = vsel %vm734_vm5, %v1985_v44, 128  ;;  %v770_v30 = vsel %vm738_vm6, %v1988_v58, 128 }
 0x107   : > { %v825_v33 = vsel %vm824_vm9, %v821_v27, %v758_v24  ;;  %v774_v61 = vsel %vm742_vm8, %v1991_v11, 128  ;;  %vm716_vm12 = vcmp.le.f32.partialorder %v1851_v18, %v1973_v0  ;;  %vm720_vm14 = vcmp.le.f32.partialorder %v1849_v15, %v1973_v0 }
 0x108   : > { %vm828_vm10 = vcmp.lt.s32.totalorder %v825_v33, %v762_v17  ;;  %vm715_vm11 = vcmp.le.f32.partialorder %v1872_v42, %v2028_v31  ;;  %vm719_vm13 = vcmp.le.f32.partialorder %v1898_v56, %v2028_v31  ;;  %vm724_vm15 = vcmp.le.f32.partialorder %v1854_v20, %v1973_v0 }
 0x109   : > { %v829_v3 = vsel %vm828_vm10, %v825_v33, %v762_v17  ;;  %vm728_vm1 = vcmp.le.f32.partialorder %v1859_v32, %v1973_v0  ;;  %vm732_vm2 = vcmp.le.f32.partialorder %v1870_v41, %v1973_v0  ;;  %vm736_vm3 = vcmp.le.f32.partialorder %v1892_v59, %v1973_v0 }
 0x10a   : > { %vm832_vm0 = vcmp.lt.s32.totalorder %v829_v3, %v766_v57  ;;  %vm723_vm4 = vcmp.le.f32.partialorder %v1908_v22, %v2028_v31  ;;  %vm727_vm5 = vcmp.le.f32.partialorder %v1924_v21, %v2028_v31  ;;  %v748_v15 = vsel %vm716_vm12, %v1968_v37, 128 }
 0x10b   : > { %v833_v18 = vsel %vm832_vm0, %v829_v3, %v766_v57  ;;  %v747_v42 = vsel %vm715_vm11, %v1968_v37, 128  ;;  %v751_v53 = vsel %vm719_vm13, %v1998_v13, 128  ;;  %v752_v56 = vsel %vm720_vm14, %v1998_v13, 128 }
 0x10c   : > { %vm836_vm6 = vcmp.lt.s32.totalorder %v833_v18, %v770_v30  ;;  %vm731_vm7 = vcmp.le.f32.partialorder %v1934_v48, %v2028_v31  ;;  %vm735_vm8 = vcmp.le.f32.partialorder %v1952_v1, %v2028_v31  ;;  %vm739_vm9 = vcmp.le.f32.partialorder %v1956_v54, %v2028_v31 }
 0x10d   : > { %vm740_vm10 = vcmp.le.f32.partialorder %v1927_v34, %v1973_v0  ;;  %v837_v22 = vsel %vm836_vm6, %v833_v18, %v770_v30  ;;  %vm743_vm11 = vcmp.le.f32.partialorder %v1962_v49, %v2028_v31  ;;  %v755_v21 = vsel %vm723_vm4, %v2004_v19, 128 }
 0x10e   : > { %v756_v48 = vsel %vm724_vm15, %v2004_v19, 128  ;;  %v759_v39 = vsel %vm727_vm5, %v2007_v5, 128  ;;  %v760_v14 = vsel %vm728_vm1, %v2007_v5, 128  ;;  %vm779_vm12 = vcmp.lt.s32.totalorder %v747_v42, %v751_v53 }
 0x10f   : > { %vm818_vm13 = vcmp.lt.s32.totalorder %v748_v15, %v752_v56  ;;  %v763_v12 = vsel %vm731_vm7, %v2013_v38, 128  ;;  %v780_v2 = vsel %vm779_vm12, %v747_v42, %v751_v53  ;;  %vm717_vm14 = vcmp.le.f32.partialorder %v1874_v43, %v2028_v31 }
 0x110   : > { %v819_v51 = vsel %vm818_vm13, %v748_v15, %v752_v56  ;;  %vm840_vm0 = vcmp.lt.s32.totalorder %v837_v22, %v774_v61  ;;  %v764_v20 = vsel %vm732_vm2, %v2013_v38, 128  ;;  %vm783_vm15 = vcmp.lt.s32.totalorder %v780_v2, %v755_v21 }
 0x111   : > { %vm822_vm4 = vcmp.lt.s32.totalorder %v819_v51, %v756_v48  ;;  %v767_v32 = vsel %vm735_vm8, %v2016_v23, 128  ;;  %v768_v50 = vsel %vm736_vm3, %v2016_v23, 128  ;;  %v784_v16 = vsel %vm783_vm15, %v780_v2, %v755_v21 }
 0x112   : > { %v823_v47 = vsel %vm822_vm4, %v819_v51, %v756_v48  ;;  %v771_v41 = vsel %vm739_vm9, %v2026_v28, 128  ;;  %v772_v52 = vsel %vm740_vm10, %v2026_v28, 128  ;;  %vm787_vm1 = vcmp.lt.s32.totalorder %v784_v16, %v759_v39 }
 0x113   : > { %vm826_vm2 = vcmp.lt.s32.totalorder %v823_v47, %v760_v14  ;;  %v841_v1 = vsel %vm840_vm0, %v837_v22, %v774_v61  ;;  %v788_v24 = vsel %vm787_vm1, %v784_v16, %v759_v39  ;;  %vm721_vm3 = vcmp.le.f32.partialorder %v1862_v35, %v2028_v31 }
 0x114   : > { %v827_v27 = vsel %vm826_vm2, %v823_v47, %v760_v14  ;;  %v775_v59 = vsel %vm743_vm11, %v2031_v36, 128  ;;  %vm791_vm5 = vcmp.lt.s32.totalorder %v788_v24, %v763_v12  ;;  %vm725_vm7 = vcmp.le.f32.partialorder %v1877_v46, %v2028_v31 }
 0x115   : > { %vm830_vm6 = vcmp.lt.s32.totalorder %v827_v27, %v764_v20  ;;  %v792_v34 = vsel %vm791_vm5, %v788_v24, %v763_v12  ;;  %vm744_vm8 = vcmp.le.f32.partialorder %v1947_v7, %v1973_v0  ;;  %vm746_vm9 = vcmp.le.f32.partialorder %v1945_v8, %v1973_v0 }
 0x116   : > { %v831_v54 = vsel %vm830_vm6, %v827_v27, %v764_v20  ;;  %vm795_vm10 = vcmp.lt.s32.totalorder %v792_v34, %v767_v32  ;;  %v749_v35 = vsel %vm717_vm14, %v1971_v26, 128  ;;  %v753_v49 = vsel %vm721_vm3, %v1976_v25, 128 }
 0x117   : > { %vm834_vm12 = vcmp.lt.s32.totalorder %v831_v54, %v768_v50  ;;  %v796_v17 = vsel %vm795_vm10, %v792_v34, %v767_v32  ;;  %vm729_vm11 = vcmp.le.f32.partialorder %v1887_v4, %v2028_v31  ;;  %v757_v46 = vsel %vm725_vm7, %v1979_v45, 128 }
 0x118   : > { %v835_v57 = vsel %vm834_vm12, %v831_v54, %v768_v50  ;;  %vm799_vm13 = vcmp.lt.s32.totalorder %v796_v17, %v771_v41  ;;  %v776_v8 = vsel %vm744_vm8, %v2031_v36, 128  ;;  %v778_v7 = vsel %vm746_vm9, %v2034_v29, 128 }
 0x119   : > { %vm838_vm0 = vcmp.lt.s32.totalorder %v835_v57, %v772_v52  ;;  %v800_v0 = vsel %vm799_vm13, %v796_v17, %v771_v41  ;;  %vm781_vm15 = vcmp.lt.s32.totalorder %v749_v35, %v753_v49  ;;  %vm844_vm4 = vcmp.lt.s32.totalorder %v841_v1, %v778_v7 }
 0x11a   : > { %v839_v30 = vsel %vm838_vm0, %v835_v57, %v772_v52  ;;  %vm803_vm14 = vcmp.lt.s32.totalorder %v800_v0, %v775_v59  ;;  %v782_v43 = vsel %vm781_vm15, %v749_v35, %v753_v49  ;;  %v845_v33 = vsel %vm844_vm4, %v841_v1, %v778_v7 }
 0x11b   : > { %vm842_vm1 = vcmp.lt.s32.totalorder %v839_v30, %v776_v8  ;;  %v804_v61 = vsel %vm803_vm14, %v800_v0, %v775_v59  ;;  %vm733_vm2 = vcmp.le.f32.partialorder %v1912_v62, %v2028_v31  ;;  %vm785_vm3 = vcmp.lt.s32.totalorder %v782_v43, %v757_v46  ;;  %v1458_v59 = vld [vmem:[%s1646_s15 + $0x18] sm:$0xff] }
 0x11c   : > { %v843_v3 = vsel %vm842_vm1, %v839_v30, %v776_v8  ;;  %v761_v18 = vsel %vm729_vm11, %v1982_v63, 128  ;;  %v786_v15 = vsel %vm785_vm3, %v782_v43, %v757_v46  ;;  %vm737_vm6 = vcmp.le.f32.partialorder %v1931_v40, %v2028_v31  ;;  %v1460_v46 = vld [vmem:[%s1646_s15 + $0x28] sm:$0xff]  ;;  %v1461_v43 = vld [vmem:[%s1646_s15 + $0x30] sm:$0xff] }
 0x11d   : > { %vm846_vm5 = vcmp.lt.s32.totalorder %v843_v3, %v845_v33  ;;  %vm789_vm7 = vcmp.lt.s32.totalorder %v786_v15, %v761_v18  ;;  %v765_v53 = vsel %vm733_vm2, %v1985_v44, 128  ;;  %vm741_vm8 = vcmp.le.f32.partialorder %v1943_v6, %v2028_v31 }
 0x11e   : > { %v847_v42 = vsel %vm846_vm5, %v843_v3, %v845_v33  ;;  %v790_v56 = vsel %vm789_vm7, %v786_v15, %v761_v18  ;;  %v769_v62 = vsel %vm737_vm6, %v1988_v58, 128  ;;  %vm745_vm12 = vcmp.le.f32.partialorder %v1960_v60, %v2028_v31 }
 0x11f   : > { %v848_v22 = vrot.slane %v847_v42, 4  ;;  %vm793_vm9 = vcmp.lt.s32.totalorder %v790_v56, %v765_v53  ;;  %v773_v40 = vsel %vm741_vm8, %v1991_v11, 128  ;;  %v777_v14 = vsel %vm745_vm12, %v2034_v29, 128 }
 0x120   : > { %v794_v21 = vsel %vm793_vm9, %v790_v56, %v765_v53  ;;  %v1544_v31 = vmov 1.0  }
 0x121   : > { %vm849_vm10 = vcmp.lt.s32.totalorder %v847_v42, %v848_v22  ;;  %vm797_vm11 = vcmp.lt.s32.totalorder %v794_v21, %v769_v62 }
 0x122   : > { %v850_v4 = vsel %vm849_vm10, %v847_v42, %v848_v22  ;;  %v798_v48 = vsel %vm797_vm11, %v794_v21, %v769_v62 }
 0x123   : > { %v851_v39 = vrot.slane %v850_v4, 2  ;;  %vm801_vm13 = vcmp.lt.s32.totalorder %v798_v48, %v773_v40 }
 0x124   : > { %v802_v12 = vsel %vm801_vm13, %v798_v48, %v773_v40  ;;  %vm858_vm13 = vcmask 1040384  }
 0x125   : > { %vm852_vm0 = vcmp.lt.s32.totalorder %v850_v4, %v851_v39  ;;  %vm805_vm15 = vcmp.lt.s32.totalorder %v802_v12, %v777_v14 }
 0x126   : > { %v853_v6 = vsel %vm852_vm0, %v850_v4, %v851_v39  ;;  %v806_v2 = vsel %vm805_vm15, %v802_v12, %v777_v14  ;;  %vm862_vm15 = vcmp.lt.s32.totalorder %v698_v55, 256 }
 0x127   : > { %v854_v51 = vrot.slane %v853_v6, 1  ;;  %vm807_vm4 = vcmp.lt.s32.totalorder %v804_v61, %v806_v2 }
 0x128   : > { %v808_v20 = vsel %vm807_vm4, %v804_v61, %v806_v2  ;;  %v1462_v61 = vld [vmem:[%s1646_s15 + $0x38] sm:$0xff] }
 0x129   : > { %vm855_vm14 = vcmp.lt.s32.totalorder %v853_v6, %v854_v51  ;;  %v809_v32 = vrot.slane %v808_v20, 4 }
 0x12a   : > { %v2148_v60 = vsel %vm855_vm14, %v853_v6, %v854_v51 }
 0x12b   : > { %vm896_vm1 = vcmp.eq.s32.totalorder %v2034_v29, %v2148_v60  ;;  %vm810_vm2 = vcmp.lt.s32.totalorder %v808_v20, %v809_v32  ;;  %vm894_vm3 = vcmp.eq.s32.totalorder %v2031_v36, %v2148_v60  ;;  %vm892_vm5 = vcmp.eq.s32.totalorder %v1991_v11, %v2148_v60 }
 0x12c   : > { %1362 = vmatpush.msk.msrb.mxu3 %vm896_vm1, %v1544_v31  ;;  %v811_v50 = vsel %vm810_vm2, %v808_v20, %v809_v32  ;;  %vm890_vm7 = vcmp.eq.s32.totalorder %v2026_v28, %v2148_v60  ;;  %vm888_vm8 = vcmp.eq.s32.totalorder %v1988_v58, %v2148_v60  ;;  %vm886_vm10 = vcmp.eq.s32.totalorder %v2016_v23, %v2148_v60 }
 0x12d   : > { %v812_v16 = vrot.slane %v811_v50, 2  ;;  %vm884_vm11 = vcmp.eq.s32.totalorder %v1985_v44, %v2148_v60  ;;  %v857_v1 = vrot.slane %v2148_v60, 7  ;;  %vm882_vm4 = vcmp.eq.s32.totalorder %v2013_v38, %v2148_v60 }
 0x12e   : > { %1363 = vmatpush.msk.msrb.mxu3 %vm894_vm3, %v1544_v31 }
 0x12f   : > { %vm813_vm6 = vcmp.lt.s32.totalorder %v811_v50, %v812_v16 }
 0x130   : > { %1364 = vmatpush.msk.msrb.mxu3 %vm892_vm5, %v1544_v31  ;;  %v814_v47 = vsel %vm813_vm6, %v811_v50, %v812_v16  ;;  %vm880_vm5 = vcmp.eq.s32.totalorder %v1982_v63, %v2148_v60 }
 0x131   : > { %v815_v41 = vrot.slane %v814_v47, 1 }
 0x132   : > { %1365 = vmatpush.msk.msrb.mxu3 %vm890_vm7, %v1544_v31  ;;  %vm878_vm7 = vcmp.eq.s32.totalorder %v2007_v5, %v2148_v60 }
 0x133   : > { %vm816_vm9 = vcmp.lt.s32.totalorder %v814_v47, %v815_v41 }
 0x134   : > { %1366 = vmatpush.msk.msrb.mxu3 %vm888_vm8, %v1544_v31  ;;  %v2166_v52 = vsel %vm816_vm9, %v814_v47, %v815_v41  ;;  %vm876_vm9 = vcmp.eq.s32.totalorder %v1979_v45, %v2148_v60 }
 0x135   : > { %vm895_vm12 = vcmp.eq.s32.totalorder %v2034_v29, %v2166_v52  ;;  %vm893_vm0 = vcmp.eq.s32.totalorder %v2031_v36, %v2166_v52  ;;  %vm871_vm14 = vcmp.eq.s32.totalorder %v1976_v25, %v2166_v52  ;;  %vm869_vm1 = vcmp.eq.s32.totalorder %v1998_v13, %v2166_v52 }
 0x136   : > { %1367 = vmatpush.msk.msrb.mxu3 %vm886_vm10, %v1544_v31  ;;  %1346 = vmatpush.msk.msrb.mxu2 %vm895_vm12, %v1544_v31  ;;  %vm867_vm2 = vcmp.eq.s32.totalorder %v1971_v26, %v2166_v52  ;;  %vm891_vm3 = vcmp.eq.s32.totalorder %v1991_v11, %v2166_v52  ;;  %v859_v55 = vsel %vm858_vm13, %v2166_v52, %v857_v1 }
 0x137   : > { %864 = vst.msk [vmem:[%s258_s24] sm:$0x3] %vm862_vm15, %v859_v55  ;;  %vm889_vm6 = vcmp.eq.s32.totalorder %v2026_v28, %v2166_v52  ;;  %vm887_vm8 = vcmp.eq.s32.totalorder %v1988_v58, %v2166_v52  ;;  %vm885_vm10 = vcmp.eq.s32.totalorder %v2016_v23, %v2166_v52  ;;  %vm874_vm12 = vcmp.eq.s32.totalorder %v2004_v19, %v2148_v60  ;;  %v977_v58 = vpop.trf.xlu1 }
 0x138   : > { %1368 = vmatpush.msk.msrb.mxu3 %vm884_vm11, %v1544_v31  ;;  %1347 = vmatpush.msk.msrb.mxu2 %vm893_vm0, %v1544_v31  ;;  %vm883_vm11 = vcmp.eq.s32.totalorder %v1985_v44, %v2166_v52  ;;  %vm872_vm13 = vcmp.eq.s32.totalorder %v1976_v25, %v2148_v60  ;;  %vm881_vm0 = vcmp.eq.s32.totalorder %v2013_v38, %v2166_v52  ;;  %v1457_v38 = vld [vmem:[%s1646_s15 + $0x10] sm:$0xff] }
 0x139   : > { %vm870_vm15 = vcmp.eq.s32.totalorder %v1998_v13, %v2148_v60 }
 0x13a   : > { %1369 = vmatpush.msk.msrb.mxu3 %vm882_vm4, %v1544_v31  ;;  %1348 = vmatpush.msk.msrb.mxu2 %vm891_vm3, %v1544_v31  ;;  %vm879_vm4 = vcmp.eq.s32.totalorder %v1982_v63, %v2166_v52  ;;  %vm868_vm3 = vcmp.eq.s32.totalorder %v1971_v26, %v2148_v60 }
 0x13c   : > { %1370 = vmatpush.msk.msrb.mxu3 %vm880_vm5, %v1544_v31  ;;  %1349 = vmatpush.msk.msrb.mxu2 %vm889_vm6, %v1544_v31  ;;  %vm877_vm5 = vcmp.eq.s32.totalorder %v2007_v5, %v2166_v52  ;;  %vm866_vm6 = vcmp.eq.s32.totalorder %v1968_v37, %v2148_v60 }
 0x13e   : > { %1371 = vmatpush.msk.msrb.mxu3 %vm878_vm7, %v1544_v31  ;;  %1350 = vmatpush.msk.msrb.mxu2 %vm887_vm8, %v1544_v31  ;;  %vm875_vm7 = vcmp.eq.s32.totalorder %v1979_v45, %v2166_v52  ;;  %vm873_vm8 = vcmp.eq.s32.totalorder %v2004_v19, %v2166_v52 }
 0x13f   : > { %v978_v63 = vpop.trf.xlu1 }
 0x140   : > { %1372 = vmatpush.msk.msrb.mxu3 %vm876_vm9, %v1544_v31  ;;  %1351 = vmatpush.msk.msrb.mxu2 %vm885_vm10, %v1544_v31  ;;  %vm865_vm9 = vcmp.eq.s32.totalorder %v1968_v37, %v2166_v52 }
 0x142   : > { %1373 = vmatpush.msk.msrb.mxu3 %vm874_vm12, %v1544_v31  ;;  %1352 = vmatpush.msk.msrb.mxu2 %vm883_vm11, %v1544_v31 }
 0x144   : > { %1374 = vmatpush.msk.msrb.mxu3 %vm872_vm13, %v1544_v31  ;;  %1353 = vmatpush.msk.msrb.mxu2 %vm881_vm0, %v1544_v31 }
 0x146   : > { %1375 = vmatpush.msk.msrb.mxu3 %vm870_vm15, %v1544_v31  ;;  %1354 = vmatpush.msk.msrb.mxu2 %vm879_vm4, %v1544_v31 }
 0x147   : > { %v979_v45 = vpop.trf.xlu1 }
 0x148   : > { %1376 = vmatpush.msk.msrb.mxu3 %vm868_vm3, %v1544_v31  ;;  %1355 = vmatpush.msk.msrb.mxu2 %vm877_vm5, %v1544_v31 }
 0x14a   : > { %1377 = vmatpush.msk.msrb.mxu3 %vm866_vm6, %v1544_v31  ;;  %1356 = vmatpush.msk.msrb.mxu2 %vm875_vm7, %v1544_v31 }
 0x14b   : > { %1038 = vmatmul.f32.vlgmr.msrb.gmra.mxu3 %v977_v58 }
 0x14c   : > { %1357 = vmatpush.msk.msrb.mxu2 %vm873_vm8, %v1544_v31 }
 0x14e   : > { %1358 = vmatpush.msk.msrb.mxu2 %vm871_vm14, %v1544_v31 }
 0x14f   : > { %v980_v25 = vpop.trf.xlu1 }
 0x150   : > { %1359 = vmatpush.msk.msrb.mxu2 %vm869_vm1, %v1544_v31 }
 0x152   : > { %1360 = vmatpush.msk.msrb.mxu2 %vm867_vm2, %v1544_v31 }
 0x153   : > { %1041 = vmatmul.f32.gmra.mxu3 %v978_v63 }
 0x154   : > { %1361 = vmatpush.msk.msrb.mxu2 %vm865_vm9, %v1544_v31 }
 0x155   : > { %1009 = vmatmul.f32.vlgmr.msrb.gmra.mxu2 %v977_v58 }
 0x15b   : > { %1044 = vmatmul.f32.gmra.mxu3 %v979_v45 }
 0x15d   : > { %1012 = vmatmul.f32.gmra.mxu2 %v978_v63 }
 0x163   : > { %1047 = vmatmul.f32.gmra.mxu3 %v980_v25 }
 0x165   : > { %1015 = vmatmul.f32.gmra.mxu2 %v979_v45 }
 0x16d   : > { %1018 = vmatmul.f32.gmra.mxu2 %v980_v25 }
 0x1ce   : > { %v1039_v37 = vpop.f32.mrf.mxu3 }
 0x1cf   : > { %1052 = vst [vmem:[%s2273_s29 + $0x8] sm:$0xff] %v1039_v37  ;;  %v1060_v19 = vsub.f32 %v1039_v37, %v1658_v10  ;;  %v1459_v10 = vld [vmem:[%s1646_s15 + $0x20] sm:$0xff]  ;;  %s1104_s15 = scalar_lea.sflag [#allocation3], %s256_s16 }
 0x1d1   : > { %v1068_v36 = vmul.f32 %v1060_v19, %v1060_v19 }
 0x1d6   : > { %v1042_v26 = vpop.f32.mrf.mxu3 }
 0x1d7   : > { %1054 = vst [vmem:[%s2273_s29 + $0x18] sm:$0xff] %v1042_v26  ;;  %v1062_v34 = vsub.f32 %v1042_v26, %v1458_v59 }
 0x1d8   : > { %v1010_v44 = vpop.f32.mrf.mxu2 }
 0x1d9   : > { %1051 = vst [vmem:[%s2273_s29] sm:$0xff] %v1010_v44  ;;  %v1059_v13 = vsub.f32 %v1010_v44, %v1655_v9  ;;  %v1070_v49 = vmul.f32 %v1062_v34, %v1062_v34 }
 0x1db   : > { %v1067_v28 = vmul.f32 %v1059_v13, %v1059_v13 }
 0x1dd   : > { %v1075_v27 = vadd.f32 %v1068_v36, %v1067_v28 }
 0x1de   : > { %v1045_v11 = vpop.f32.mrf.mxu3 }
 0x1df   : > { %1056 = vst [vmem:[%s2273_s29 + $0x28] sm:$0xff] %v1045_v11  ;;  %v1064_v8 = vsub.f32 %v1045_v11, %v1460_v46 }
 0x1e0   : > { %v1013_v5 = vpop.f32.mrf.mxu2 }
 0x1e1   : > { %1053 = vst [vmem:[%s2273_s29 + $0x10] sm:$0xff] %v1013_v5  ;;  %v1061_v23 = vsub.f32 %v1013_v5, %v1457_v38  ;;  %v1072_v30 = vmul.f32 %v1064_v8, %v1064_v8 }
 0x1e3   : > { %v1069_v29 = vmul.f32 %v1061_v23, %v1061_v23 }
 0x1e5   : > { %v1076_v54 = vadd.f32 %v1075_v27, %v1069_v29 }
 0x1e6   : > { %v1048_v24 = vpop.f32.mrf.mxu3 }
 0x1e7   : > { %1058 = vst [vmem:[%s2273_s29 + $0x38] sm:$0xff] %v1048_v24  ;;  %v1077_v57 = vadd.f32 %v1076_v54, %v1070_v49  ;;  %v1066_v3 = vsub.f32 %v1048_v24, %v1462_v61 }
 0x1e8   : > { %v1016_v9 = vpop.f32.mrf.mxu2 }
 0x1e9   : > { %1055 = vst [vmem:[%s2273_s29 + $0x20] sm:$0xff] %v1016_v9  ;;  %v1063_v35 = vsub.f32 %v1016_v9, %v1459_v10  ;;  %v1074_v53 = vmul.f32 %v1066_v3, %v1066_v3 }
 0x1eb   : > { %v1071_v17 = vmul.f32 %v1063_v35, %v1063_v35 }
 0x1ed   : > { %v1078_v7 = vadd.f32 %v1077_v57, %v1071_v17 }
 0x1ef   : > { %v1079_v18 = vadd.f32 %v1078_v7, %v1072_v30 }
 0x1f0   : > { %v1019_v0 = vpop.f32.mrf.mxu2 }
 0x1f1   : > { %1057 = vst [vmem:[%s2273_s29 + $0x30] sm:$0xff] %v1019_v0  ;;  %v1065_v33 = vsub.f32 %v1019_v0, %v1461_v43  ;;  %s1483_s29 = scalar_lea.hbm %s2339_s4, 4 }
 0x1f2   : > { %p1485_p2 = scmp.lt.s32.totalorder %s1483_s29, %s1479_s25 }
 0x1f3   : > { %v1073_v15 = vmul.f32 %v1065_v33, %v1065_v33 }
 0x1f4   : > { %p1486_p3 = por %p1485_p2, %p1484_p1 }
 0x1f5   : > { %v1080_v42 = vadd.f32 %v1079_v18, %v1073_v15 }
 0x1f6   : > { %p1487_p5 = pnand %p1486_p3, %p1482_p0 }
 0x1f7   : > { %v1081_v56 = vadd.f32 %v1080_v42, %v1074_v53 }
 0x1f9   : > { %1082 = vadd.xlane.f32.xlu2 %v1081_v56 }
 0x1fa   : > { %1490 = shalt.err (!%p1487_p5)
}
 0x1fb   : > { %1397 = dma.vmem_to_hbm [thread:$0]  (%p1615_p4), %s1129_s11, 32, %s1131_s13, %s1104_s15   ;;  %vm1092_vm14 = vcmask 0  }
 0x1fc   : > { %s292_s24 = scalar_lea.vmem %s2340_s5, %s1635_s9 }
 0x26c   : > { %v1083_v22 = vpop.xlane.xlu2 %1082 }
 0x26d   : > { %v1084_v62 = vrot.slane %v1083_v22, 4 }
 0x26f   : > { %v1085_v21 = vadd.f32 %v1084_v62, %v1083_v22 }
 0x271   : > { %v1086_v4 = vrot.slane %v1085_v21, 2 }
 0x273   : > { %v1087_v40 = vadd.f32 %v1086_v4, %v1085_v21 }
 0x275   : > { %v1088_v48 = vrot.slane %v1087_v40, 1 }
 0x277   : > { %v1089_v39 = vadd.f32 %v1088_v48, %v1087_v40 }
 0x279   : > { %1395 = vpush %v1089_v39 }
 0x2aa   : > { %s1396_s8 = spop %1395 }
 0x2ab   : > { %v1091_v14 = vstv %s1396_s8 }
 0x2ac   : > { %1093 = vst.msk [vmem:[%s292_s24] sm:$0x1] %vm1092_vm14, %v1091_v14 }
 0x2ad PF: > { %p1403_p4 = scmp.ge.s32.totalorder %s1541_s23, 2  ;;  %s1157_s28 = sand.u32 1, %s1521_s18  }
 0x2ae   : > { %s1158_s10 = scalar_lea.sflag [#allocation3], %s1157_s28 }
 0x2af   : > { %p1400_p6 = pnand %p1403_p4, %p1622_p8 }
 0x2b1   : > { %p1401_p7 = pneg %p1400_p6 }
 0x2b3   : > { %1516 = dma.done.wait (%p1401_p7), %s1158_s10, 32  }
 0x2b4   : > { %1518 = vsyncadd (%p1401_p7), %s1158_s10, 4294967264  ;;  %s19_s23 = sadd.s32 1, %s1541_s23   ;;  %s2343_s18 = smov %s1525_s19 }
 0x2b5   : > { %p16_p9 = scmp.ge.s32.totalorder %s19_s23, 4   ;;  %s2344_s19 = smov %s1529_s20 }
 0x2b6   : > { %s2345_s20 = smov %s1628_s6  ;;  %s2346_s21 = smov %s1537_s22 }
 0x2b7   : > { %s2347_s22 = smov %s2349_s26  ;;  %18 = sbr.rel (!%p16_p9) target bundleno = 4 (0x4), region = 91 }
 0x2bc   :  { %1173 = vsyncpa [#allocation3], 1 }
 0x2bd   :  { %1175 = vsyncpa [#allocation3 + $0x1], 1 }

</bundles_post_ra>
